<compile_context>
chip_gen: v7x
topology: tpu7x:2x2x1
jax: 0.10.0
libtpu: 0.0.40
codegen_flags: <defaults>
</compile_context>

<pallas_src>
import functools

import jax
import jax.numpy as jnp
import numpy as np
from jax import lax
from jax.experimental import pallas as pl
from jax.experimental.pallas import tpu as pltpu

LANES = 128               # lane width (fast axis)
NUM_CLASSES = 8           # static upper bound on class ids (labels / preds in [0, NUM_CLASSES))
TM_MAX = 2048             # rows per grid block (int32: 1 MiB/buffer -> 4 MiB double-buffered)
CHUNK_ROWS = 64           # rows per in-register chunk (int32: 8 vregs per tile)
SMALL_INPUT_ELEMS = 1 << 16   # below this the fused pure-JAX path beats kernel launch cost


def _default_splits():
    """2-way parallel grid axis only on chips with >1 TensorCore per device."""
    try:
        kind = jax.devices()[0].device_kind.lower()
    except Exception:
        return 1
    return 2 if any(tag in kind for tag in ("v4", "v5p", "v7", "7x")) else 1


def _metrics_kernel(pred_ref, lbl_ref, out_ref, *, num_classes, rows, chunk):
    """Accumulate per-class / per-lane histograms for one (TM, 128) row block.

    out_ref rows (int32, per lane):
      [0 : C)   per-class intersection counts
      [C : 2C)  per-class pred counts
      [2C: 3C)  per-class label counts
      [3C]      BinaryAccuracy 'correct' counts
      rest      zero padding (sublane alignment)
    """
    c = pl.program_id(0)            # parallel split index
    i = pl.program_id(1)            # block index within the split (reduction axis)
    spc = pl.num_programs(1)
    tm = pred_ref.shape[0]
    n_chunks = tm // chunk
    n_acc = 3 * num_classes + 1
    acc_rows = out_ref.shape[0]

    @pl.when(i == 0)
    def _init():
        out_ref[...] = jnp.zeros_like(out_ref)

    def chunk_sums(p, l):
        """Per-lane partial sums of one chunk -> (3C+1, LANES) int32 (stays in vregs)."""
        eq = p == l
        inter_rows, pred_rows, lbl_rows = [], [], []
        for k in range(num_classes):
            pk = p == k
            lk = l == k
            ik = jnp.logical_and(lk, eq)          # == (lbl==k) & (pred==k)
            inter_rows.append(jnp.sum(ik.astype(jnp.int32), axis=0, keepdims=True))
            pred_rows.append(jnp.sum(pk.astype(jnp.int32), axis=0, keepdims=True))
            lbl_rows.append(jnp.sum(lk.astype(jnp.int32), axis=0, keepdims=True))
        agree = (eq == (l >= 0)).astype(jnp.int32)
        agree_row = jnp.sum(agree, axis=0, keepdims=True)
        return jnp.concatenate(inter_rows + pred_rows + lbl_rows + [agree_row], axis=0)

    def flush(acc_live):
        # One aligned full-block update per grid step (zero-pad to the 8-row multiple).
        pad = acc_rows - n_acc
        if pad:
            acc_live = jnp.concatenate(
                [acc_live, jnp.zeros((pad, LANES), jnp.int32)], axis=0)
        out_ref[...] += acc_live

    blk = c * spc + i               # logical row-block index
    row_start = blk * tm
    is_full = row_start + tm <= rows                 # block entirely inside the data
    is_partial = jnp.logical_and(row_start < rows, jnp.logical_not(is_full))

    @pl.when(is_full)
    def _full():
        # Steady state: fully unrolled chunk loop, no masking (pad value -1 is inert).
        acc = jnp.zeros((n_acc, LANES), jnp.int32)
        for j in range(n_chunks):
            r0 = j * chunk
            p = pred_ref[pl.ds(r0, chunk), :].astype(jnp.int32)
            l = lbl_ref[pl.ds(r0, chunk), :].astype(jnp.int32)
            acc = acc + chunk_sums(p, l)
        flush(acc)

    @pl.when(is_partial)
    def _partial():
        # Boundary block only: mask rows past the (row-aligned) end of the data.
        riota = lax.broadcasted_iota(jnp.int32, (chunk, LANES), 0) + row_start

        def body(j, acc):
            r0 = pl.multiple_of(j * chunk, chunk)
            valid = (riota + j * chunk) < rows
            p = jnp.where(valid, pred_ref[pl.ds(r0, chunk), :].astype(jnp.int32), -1)
            l = jnp.where(valid, lbl_ref[pl.ds(r0, chunk), :].astype(jnp.int32), -1)
            return acc + chunk_sums(p, l)

        acc = lax.fori_loop(0, n_chunks, body, jnp.zeros((n_acc, LANES), jnp.int32))
        flush(acc)
    # Logical blocks fully past `rows` (the clamped extra block of the parallel split)
    # fall through both branches and contribute nothing.


def _as_signed_int(x):
    if jnp.issubdtype(x.dtype, jnp.signedinteger) and x.dtype.itemsize <= 4:
        return x
    return x.astype(jnp.int32)


def _finalize(inter, pcnt, lcnt, correct, total, num_classes):
    """Tiny O(num_classes) epilogue shared by the kernel and the fused fast path."""
    cls = jnp.arange(num_classes, dtype=jnp.int32)
    lbl_max = jnp.max(jnp.where(lcnt > 0, cls, -1))       # == lbl.max() for valid inputs
    union = pcnt + lcnt - inter
    jac = jnp.where(union > 0, inter / jnp.where(union > 0, union, 1.0), 0.0)
    # macro average: only classes present in pred or lbl and within lbl.max()+1 get weight 1
    w = jnp.logical_and((pcnt + lcnt) > 0, cls <= lbl_max).astype(jnp.float32)
    w_sum = jnp.sum(w)
    miou = jnp.where(w_sum > 0, jnp.sum(w * jac) / jnp.maximum(w_sum, 1.0), 0.0)
    miou = jnp.where(lbl_max > 0, miou, jnp.float32(1.0))  # `if lbl.max() > 0` branch
    return {
        "miou": miou,
        "acc": correct / total,
        "correct": correct,
        "total": total,
        "lbl_max": lbl_max.astype(jnp.float32),
    }


def _fused_counts(p, l, num_classes):
    """Pure-JAX fused histogram for tiny inputs (kernel launch would dominate)."""
    cls = jnp.arange(num_classes, dtype=jnp.int32)
    pm = p[:, None] == cls[None, :]
    lm = l[:, None] == cls[None, :]
    pcnt = jnp.sum(pm, axis=0).astype(jnp.float32)
    lcnt = jnp.sum(lm, axis=0).astype(jnp.float32)
    inter = jnp.sum(pm & lm, axis=0).astype(jnp.float32)
    correct = jnp.sum(((p == l) == (l >= 0)).astype(jnp.int32)).astype(jnp.float32)
    return inter, pcnt, lcnt, correct


def instance_classification_metrics_fwd(pred, lbl, num_classes=NUM_CLASSES, *,
                                         tm=None, chunk=None, splits=None,
                                         use_pallas=None):
    """One forward() call: returns dict with the miou increment and accuracy stats."""
    flat_p = _as_signed_int(pred.reshape(-1))
    flat_l = _as_signed_int(lbl.reshape(-1))
    n = flat_p.shape[0]
    assert flat_l.shape[0] == n
    if flat_p.dtype != flat_l.dtype:
        flat_p = flat_p.astype(jnp.int32)
        flat_l = flat_l.astype(jnp.int32)

    if use_pallas is None:
        use_pallas = n >= SMALL_INPUT_ELEMS
    if not use_pallas:
        inter, pcnt, lcnt, correct = _fused_counts(
            flat_p.astype(jnp.int32), flat_l.astype(jnp.int32), num_classes)
        return _finalize(inter, pcnt, lcnt, correct, jnp.float32(n), num_classes)

    itemsize = flat_p.dtype.itemsize
    row_align = 32 // itemsize                 # 8 (int32) / 16 (int16) / 32 (int8) rows
    pad_elems = row_align * LANES
    n_pad = int(pl.cdiv(n, pad_elems)) * pad_elems
    if n_pad != n:
        flat_p = jnp.pad(flat_p, (0, n_pad - n), constant_values=-1)   # inert value
        flat_l = jnp.pad(flat_l, (0, n_pad - n), constant_values=-1)
    rows = n_pad // LANES
    p2 = flat_p.reshape(rows, LANES)
    l2 = flat_l.reshape(rows, LANES)

    # Block / chunk sizing (all static Python ints).
    if chunk is None:
        chunk = CHUNK_ROWS
    chunk = max(row_align, (min(chunk, rows) // row_align) * row_align)
    if tm is None:
        tm = TM_MAX
    tm = max(chunk, (min(tm, rows) // chunk) * chunk)
    assert tm % chunk == 0 and chunk % row_align == 0 and rows % row_align == 0

    total_blocks = int(pl.cdiv(rows, tm))
    if splits is None:
        splits = _default_splits()
    splits = max(1, min(int(splits), total_blocks))
    spc = int(pl.cdiv(total_blocks, splits))
    acc_rows = ((3 * num_classes + 1 + 7) // 8) * 8     # histogram rows, sublane aligned

    def in_map(c, i):
        # Clamp so the DMA never targets a block past the array; the kernel skips the
        # contribution of clamped (fully out-of-range) logical blocks.
        return (jnp.minimum(c * spc + i, total_blocks - 1), 0)

    kernel = functools.partial(_metrics_kernel, num_classes=num_classes,
                               rows=rows, chunk=chunk)
    cost = pl.CostEstimate(
        flops=int((10 * num_classes + 10) * n_pad),
        transcendentals=0,
        bytes_accessed=int(2 * n_pad * itemsize + splits * acc_rows * LANES * 4))

    partials = pl.pallas_call(
        kernel,
        out_shape=jax.ShapeDtypeStruct((splits, acc_rows, LANES), jnp.int32),
        grid_spec=pltpu.PrefetchScalarGridSpec(
            num_scalar_prefetch=0,
            grid=(splits, spc),
            in_specs=[pl.BlockSpec((tm, LANES), in_map),
                      pl.BlockSpec((tm, LANES), in_map)],
            out_specs=pl.BlockSpec((None, acc_rows, LANES), lambda c, i: (c, 0, 0)),
        ),
        compiler_params=pltpu.CompilerParams(
            dimension_semantics=("parallel", "arbitrary")),
        cost_estimate=cost,
    )(p2, l2)

    # Tiny epilogue on the ~16 KB of partial histograms.
    acc = jnp.sum(partials, axis=0)                 # combine the per-core partials
    lane_sum = jnp.sum(acc, axis=-1)                # (acc_rows,) int32
    inter = lane_sum[0:num_classes].astype(jnp.float32)
    pcnt = lane_sum[num_classes:2 * num_classes].astype(jnp.float32)
    lcnt = lane_sum[2 * num_classes:3 * num_classes].astype(jnp.float32)
    correct = lane_sum[3 * num_classes].astype(jnp.float32)
    return _finalize(inter, pcnt, lcnt, correct, jnp.float32(n), num_classes)


class InstanceClassificationMetrics:
    """Stateful glue mirroring the PyTorch module; hot path runs in Pallas."""

    def __init__(self):
        self.reset()

    def forward(self, pred, lbl):
        r = instance_classification_metrics_fwd(pred, lbl)
        self.miou_avg = self.miou_avg + r["miou"]
        self.miou_count += 1
        self.acc_correct = self.acc_correct + r["correct"]
        self.acc_total = self.acc_total + r["total"]
        return r

    def get_metrics(self, prefix=""):
        return {
            f"{prefix}/acc": self.acc_correct / jnp.maximum(self.acc_total, 1.0),
            f"{prefix}/miou": self.miou_avg / (self.miou_count + 0.0001),
        }

    def reset(self):
        self.miou_avg = jnp.float32(0.0)
        self.miou_count = 0
        self.acc_correct = jnp.float32(0.0)
        self.acc_total = jnp.float32(0.0)


def _reference(pred, lbl, num_classes=NUM_CLASSES):
    """Pure-JAX reference of the same torchmetrics semantics."""
    p = pred.reshape(-1).astype(jnp.int32)
    l = lbl.reshape(-1).astype(jnp.int32)
    lbl_max = jnp.max(l)
    cls = jnp.arange(num_classes)
    pm = p[:, None] == cls[None, :]
    lm = l[:, None] == cls[None, :]
    pcnt = jnp.sum(pm, axis=0).astype(jnp.float32)
    lcnt = jnp.sum(lm, axis=0).astype(jnp.float32)
    inter = jnp.sum(pm & lm, axis=0).astype(jnp.float32)
    union = pcnt + lcnt - inter
    jac = jnp.where(union > 0, inter / jnp.where(union > 0, union, 1.0), 0.0)
    w = (((pcnt + lcnt) > 0) & (cls <= lbl_max)).astype(jnp.float32)
    miou = jnp.where(jnp.sum(w) > 0,
                     jnp.sum(w * jac) / jnp.maximum(jnp.sum(w), 1.0), 0.0)
    miou = jnp.where(lbl_max > 0, miou, 1.0)
    acc = jnp.mean(((p == l) == (l >= 0)).astype(jnp.float32))
    return miou, acc


def _check(pred, lbl, **kw):
    r = instance_classification_metrics_fwd(pred, lbl, use_pallas=True, **kw)
    jax.block_until_ready(r["miou"])
    ref_miou, ref_acc = _reference(pred, lbl)
    np.testing.assert_allclose(np.asarray(r["miou"]), np.asarray(ref_miou),
                               rtol=1e-5, atol=1e-5)
    np.testing.assert_allclose(np.asarray(r["acc"]), np.asarray(ref_acc),
                               rtol=1e-5, atol=1e-5)
    return r


if __name__ == "__main__":
    key = jax.random.PRNGKey(0)
    k1, k2, k3, k4, k5, k6 = jax.random.split(key, 6)

    # Case 1: main instance-label-map case (2, 30, 30): single block, padded inert tail.
    shape = (2, 30, 30)
    lbl = jax.random.randint(k1, shape, 0, NUM_CLASSES, dtype=jnp.int32)
    noise = jax.random.randint(k2, shape, 0, NUM_CLASSES, dtype=jnp.int32)
    keep = jax.random.uniform(k3, shape) < 0.8
    pred = jnp.where(keep, lbl, noise).astype(jnp.int32)
    _check(pred, lbl)

    # Case 2: small tm/chunk exercises multi-block, the masked partial boundary block,
    # the forced 2-way parallel split and the clamped out-of-range logical block.
    shape2 = (3, 40, 40)
    lbl2 = jax.random.randint(k4, shape2, 0, NUM_CLASSES, dtype=jnp.int32)
    noise2 = jax.random.randint(k5, shape2, 0, NUM_CLASSES, dtype=jnp.int32)
    keep2 = jax.random.uniform(k6, shape2) < 0.7
    pred2 = jnp.where(keep2, lbl2, noise2).astype(jnp.int32)
    _check(pred2, lbl2, tm=16, chunk=8, splits=2)

    # Case 3: aligned size, multiple 64-row chunks inside one block (unrolled full path).
    shape3 = (8, 64, 64)
    lbl3 = jax.random.randint(k1, shape3, 0, NUM_CLASSES, dtype=jnp.int32)
    noise3 = jax.random.randint(k2, shape3, 0, NUM_CLASSES, dtype=jnp.int32)
    pred3 = jnp.where(jax.random.uniform(k3, shape3) < 0.9, lbl3, noise3).astype(jnp.int32)
    _check(pred3, lbl3)

    # Case 4: lbl.max() == 0 branch -> miou increment is exactly 1.
    lbl4 = jnp.zeros((2, 16, 16), jnp.int32)
    pred4 = jax.random.randint(k2, (2, 16, 16), 0, 2, dtype=jnp.int32)
    _check(pred4, lbl4)

    # Stateful module glue (auto path; tiny inputs take the fused pure-JAX fast path).
    metrics = InstanceClassificationMetrics()
    metrics.forward(pred, lbl)
    metrics.forward(pred2, lbl2)
    out = metrics.get_metrics("val")
    jax.block_until_ready(out["val/miou"])
    print("KERNEL_OK")
</pallas_src>

<mosaic_0001>
module attributes {stable_mosaic.version = 11 : i64} {
  func.func @_metrics_kernel(%arg0: i32, %arg1: i32, %arg2: memref<16x128xi32, #tpu.memory_space<vmem>>, %arg3: memref<16x128xi32, #tpu.memory_space<vmem>>, %arg4: memref<1x32x128xi32, #tpu.memory_space<vmem>>) attributes {dimension_semantics = [#tpu.dimension_semantics<parallel>, #tpu.dimension_semantics<arbitrary>], iteration_bounds = array<i64: 1, 1>, scalar_prefetch = 0 : i64, scratch_operands = 0 : i64, tpu.core_type = #tpu.core_type<tc>, window_params = [{transform_indices = @transform_0, window_bounds = array<i64: 16, 128>}, {transform_indices = @transform_1, window_bounds = array<i64: 16, 128>}, {transform_indices = @transform_2, window_bounds = array<i64: 1, 32, 128>}]} {
    %c0_i32 = arith.constant 0 : i32
    %0 = arith.cmpi eq, %arg1, %c0_i32 : i32
    %1 = arith.extui %0 : i1 to i32
    %c0_i32_0 = arith.constant 0 : i32
    %2 = arith.cmpi ne, %1, %c0_i32_0 : i32
    scf.if %2 {
      %c0_i32_6 = arith.constant 0 : i32
      %15 = vector.broadcast %c0_i32_6 : i32 to vector<32x128xi32>
      %c0 = arith.constant 0 : index
      %c0_7 = arith.constant 0 : index
      %c0_8 = arith.constant 0 : index
      %16 = vector.load %arg4[%c0, %c0_7, %c0_8] : memref<1x32x128xi32, #tpu.memory_space<vmem>>, vector<1x32x128xi32>
      %17 = vector.shape_cast %16 : vector<1x32x128xi32> to vector<32x128xi32>
      %18 = vector.shape_cast %15 : vector<32x128xi32> to vector<1x32x128xi32>
      tpu.vector_store %arg4[%c0, %c0_7, %c0_8], %18 {strides = array<i32>} : memref<1x32x128xi32, #tpu.memory_space<vmem>>, vector<1x32x128xi32>,
    } else {
    }
    %c1_i32 = arith.constant 1 : i32
    %3 = arith.muli %arg0, %c1_i32 : i32
    %4 = arith.addi %3, %arg1 : i32
    %c16_i32 = arith.constant 16 : i32
    %5 = arith.muli %4, %c16_i32 : i32
    %c16_i32_1 = arith.constant 16 : i32
    %6 = arith.addi %5, %c16_i32_1 : i32
    %c16_i32_2 = arith.constant 16 : i32
    %7 = arith.cmpi sle, %6, %c16_i32_2 : i32
    %c16_i32_3 = arith.constant 16 : i32
    %8 = arith.cmpi slt, %5, %c16_i32_3 : i32
    %true = arith.constant true
    %9 = arith.xori %7, %true : i1
    %10 = arith.andi %8, %9 : i1
    %11 = arith.extui %7 : i1 to i32
    %c0_i32_4 = arith.constant 0 : i32
    %12 = arith.cmpi ne, %11, %c0_i32_4 : i32
    scf.if %12 {
      %c0_i32_6 = arith.constant 0 : i32
      %15 = vector.broadcast %c0_i32_6 : i32 to vector<25x128xi32>
      %c0 = arith.constant 0 : index
      %c0_7 = arith.constant 0 : index
      %16 = vector.load %arg2[%c0, %c0_7] : memref<16x128xi32, #tpu.memory_space<vmem>>, vector<16x128xi32>
      %c0_8 = arith.constant 0 : index
      %c0_9 = arith.constant 0 : index
      %17 = vector.load %arg3[%c0_8, %c0_9] : memref<16x128xi32, #tpu.memory_space<vmem>>, vector<16x128xi32>
      %18 = arith.cmpi eq, %16, %17 : vector<16x128xi32>
      %c0_i32_10 = arith.constant 0 : i32
      %19 = vector.broadcast %c0_i32_10 : i32 to vector<16x128xi32>
      %20 = arith.cmpi eq, %16, %19 : vector<16x128xi32>
      %c0_i32_11 = arith.constant 0 : i32
      %21 = vector.broadcast %c0_i32_11 : i32 to vector<16x128xi32>
      %22 = arith.cmpi eq, %17, %21 : vector<16x128xi32>
      %23 = arith.andi %22, %18 : vector<16x128xi1>
      %24 = arith.extui %23 : vector<16x128xi1> to vector<16x128xi32>
      %cst = arith.constant dense<0> : vector<128xi32>
      %25 = vector.multi_reduction <add>, %24, %cst [0] : vector<16x128xi32> to vector<128xi32>
      %26 = vector.shape_cast %25 : vector<128xi32> to vector<1x128xi32>
      %27 = arith.extui %20 : vector<16x128xi1> to vector<16x128xi32>
      %cst_12 = arith.constant dense<0> : vector<128xi32>
      %28 = vector.multi_reduction <add>, %27, %cst_12 [0] : vector<16x128xi32> to vector<128xi32>
      %29 = vector.shape_cast %28 : vector<128xi32> to vector<1x128xi32>
      %30 = arith.extui %22 : vector<16x128xi1> to vector<16x128xi32>
      %cst_13 = arith.constant dense<0> : vector<128xi32>
      %31 = vector.multi_reduction <add>, %30, %cst_13 [0] : vector<16x128xi32> to vector<128xi32>
      %32 = vector.shape_cast %31 : vector<128xi32> to vector<1x128xi32>
      %c1_i32_14 = arith.constant 1 : i32
      %33 = vector.broadcast %c1_i32_14 : i32 to vector<16x128xi32>
      %34 = arith.cmpi eq, %16, %33 : vector<16x128xi32>
      %c1_i32_15 = arith.constant 1 : i32
      %35 = vector.broadcast %c1_i32_15 : i32 to vector<16x128xi32>
      %36 = arith.cmpi eq, %17, %35 : vector<16x128xi32>
      %37 = arith.andi %36, %18 : vector<16x128xi1>
      %38 = arith.extui %37 : vector<16x128xi1> to vector<16x128xi32>
      %cst_16 = arith.constant dense<0> : vector<128xi32>
      %39 = vector.multi_reduction <add>, %38, %cst_16 [0] : vector<16x128xi32> to vector<128xi32>
      %40 = vector.shape_cast %39 : vector<128xi32> to vector<1x128xi32>
      %41 = arith.extui %34 : vector<16x128xi1> to vector<16x128xi32>
      %cst_17 = arith.constant dense<0> : vector<128xi32>
      %42 = vector.multi_reduction <add>, %41, %cst_17 [0] : vector<16x128xi32> to vector<128xi32>
      %43 = vector.shape_cast %42 : vector<128xi32> to vector<1x128xi32>
      %44 = arith.extui %36 : vector<16x128xi1> to vector<16x128xi32>
      %cst_18 = arith.constant dense<0> : vector<128xi32>
      %45 = vector.multi_reduction <add>, %44, %cst_18 [0] : vector<16x128xi32> to vector<128xi32>
      %46 = vector.shape_cast %45 : vector<128xi32> to vector<1x128xi32>
      %c2_i32 = arith.constant 2 : i32
      %47 = vector.broadcast %c2_i32 : i32 to vector<16x128xi32>
      %48 = arith.cmpi eq, %16, %47 : vector<16x128xi32>
      %c2_i32_19 = arith.constant 2 : i32
      %49 = vector.broadcast %c2_i32_19 : i32 to vector<16x128xi32>
      %50 = arith.cmpi eq, %17, %49 : vector<16x128xi32>
      %51 = arith.andi %50, %18 : vector<16x128xi1>
      %52 = arith.extui %51 : vector<16x128xi1> to vector<16x128xi32>
      %cst_20 = arith.constant dense<0> : vector<128xi32>
      %53 = vector.multi_reduction <add>, %52, %cst_20 [0] : vector<16x128xi32> to vector<128xi32>
      %54 = vector.shape_cast %53 : vector<128xi32> to vector<1x128xi32>
      %55 = arith.extui %48 : vector<16x128xi1> to vector<16x128xi32>
      %cst_21 = arith.constant dense<0> : vector<128xi32>
      %56 = vector.multi_reduction <add>, %55, %cst_21 [0] : vector<16x128xi32> to vector<128xi32>
      %57 = vector.shape_cast %56 : vector<128xi32> to vector<1x128xi32>
      %58 = arith.extui %50 : vector<16x128xi1> to vector<16x128xi32>
      %cst_22 = arith.constant dense<0> : vector<128xi32>
      %59 = vector.multi_reduction <add>, %58, %cst_22 [0] : vector<16x128xi32> to vector<128xi32>
      %60 = vector.shape_cast %59 : vector<128xi32> to vector<1x128xi32>
      %c3_i32 = arith.constant 3 : i32
      %61 = vector.broadcast %c3_i32 : i32 to vector<16x128xi32>
      %62 = arith.cmpi eq, %16, %61 : vector<16x128xi32>
      %c3_i32_23 = arith.constant 3 : i32
      %63 = vector.broadcast %c3_i32_23 : i32 to vector<16x128xi32>
      %64 = arith.cmpi eq, %17, %63 : vector<16x128xi32>
      %65 = arith.andi %64, %18 : vector<16x128xi1>
      %66 = arith.extui %65 : vector<16x128xi1> to vector<16x128xi32>
      %cst_24 = arith.constant dense<0> : vector<128xi32>
      %67 = vector.multi_reduction <add>, %66, %cst_24 [0] : vector<16x128xi32> to vector<128xi32>
      %68 = vector.shape_cast %67 : vector<128xi32> to vector<1x128xi32>
      %69 = arith.extui %62 : vector<16x128xi1> to vector<16x128xi32>
      %cst_25 = arith.constant dense<0> : vector<128xi32>
      %70 = vector.multi_reduction <add>, %69, %cst_25 [0] : vector<16x128xi32> to vector<128xi32>
      %71 = vector.shape_cast %70 : vector<128xi32> to vector<1x128xi32>
      %72 = arith.extui %64 : vector<16x128xi1> to vector<16x128xi32>
      %cst_26 = arith.constant dense<0> : vector<128xi32>
      %73 = vector.multi_reduction <add>, %72, %cst_26 [0] : vector<16x128xi32> to vector<128xi32>
      %74 = vector.shape_cast %73 : vector<128xi32> to vector<1x128xi32>
      %c4_i32 = arith.constant 4 : i32
      %75 = vector.broadcast %c4_i32 : i32 to vector<16x128xi32>
      %76 = arith.cmpi eq, %16, %75 : vector<16x128xi32>
      %c4_i32_27 = arith.constant 4 : i32
      %77 = vector.broadcast %c4_i32_27 : i32 to vector<16x128xi32>
      %78 = arith.cmpi eq, %17, %77 : vector<16x128xi32>
      %79 = arith.andi %78, %18 : vector<16x128xi1>
      %80 = arith.extui %79 : vector<16x128xi1> to vector<16x128xi32>
      %cst_28 = arith.constant dense<0> : vector<128xi32>
      %81 = vector.multi_reduction <add>, %80, %cst_28 [0] : vector<16x128xi32> to vector<128xi32>
      %82 = vector.shape_cast %81 : vector<128xi32> to vector<1x128xi32>
      %83 = arith.extui %76 : vector<16x128xi1> to vector<16x128xi32>
      %cst_29 = arith.constant dense<0> : vector<128xi32>
      %84 = vector.multi_reduction <add>, %83, %cst_29 [0] : vector<16x128xi32> to vector<128xi32>
      %85 = vector.shape_cast %84 : vector<128xi32> to vector<1x128xi32>
      %86 = arith.extui %78 : vector<16x128xi1> to vector<16x128xi32>
      %cst_30 = arith.constant dense<0> : vector<128xi32>
      %87 = vector.multi_reduction <add>, %86, %cst_30 [0] : vector<16x128xi32> to vector<128xi32>
      %88 = vector.shape_cast %87 : vector<128xi32> to vector<1x128xi32>
      %c5_i32 = arith.constant 5 : i32
      %89 = vector.broadcast %c5_i32 : i32 to vector<16x128xi32>
      %90 = arith.cmpi eq, %16, %89 : vector<16x128xi32>
      %c5_i32_31 = arith.constant 5 : i32
      %91 = vector.broadcast %c5_i32_31 : i32 to vector<16x128xi32>
      %92 = arith.cmpi eq, %17, %91 : vector<16x128xi32>
      %93 = arith.andi %92, %18 : vector<16x128xi1>
      %94 = arith.extui %93 : vector<16x128xi1> to vector<16x128xi32>
      %cst_32 = arith.constant dense<0> : vector<128xi32>
      %95 = vector.multi_reduction <add>, %94, %cst_32 [0] : vector<16x128xi32> to vector<128xi32>
      %96 = vector.shape_cast %95 : vector<128xi32> to vector<1x128xi32>
      %97 = arith.extui %90 : vector<16x128xi1> to vector<16x128xi32>
      %cst_33 = arith.constant dense<0> : vector<128xi32>
      %98 = vector.multi_reduction <add>, %97, %cst_33 [0] : vector<16x128xi32> to vector<128xi32>
      %99 = vector.shape_cast %98 : vector<128xi32> to vector<1x128xi32>
      %100 = arith.extui %92 : vector<16x128xi1> to vector<16x128xi32>
      %cst_34 = arith.constant dense<0> : vector<128xi32>
      %101 = vector.multi_reduction <add>, %100, %cst_34 [0] : vector<16x128xi32> to vector<128xi32>
      %102 = vector.shape_cast %101 : vector<128xi32> to vector<1x128xi32>
      %c6_i32 = arith.constant 6 : i32
      %103 = vector.broadcast %c6_i32 : i32 to vector<16x128xi32>
      %104 = arith.cmpi eq, %16, %103 : vector<16x128xi32>
      %c6_i32_35 = arith.constant 6 : i32
      %105 = vector.broadcast %c6_i32_35 : i32 to vector<16x128xi32>
      %106 = arith.cmpi eq, %17, %105 : vector<16x128xi32>
      %107 = arith.andi %106, %18 : vector<16x128xi1>
      %108 = arith.extui %107 : vector<16x128xi1> to vector<16x128xi32>
      %cst_36 = arith.constant dense<0> : vector<128xi32>
      %109 = vector.multi_reduction <add>, %108, %cst_36 [0] : vector<16x128xi32> to vector<128xi32>
      %110 = vector.shape_cast %109 : vector<128xi32> to vector<1x128xi32>
      %111 = arith.extui %104 : vector<16x128xi1> to vector<16x128xi32>
      %cst_37 = arith.constant dense<0> : vector<128xi32>
      %112 = vector.multi_reduction <add>, %111, %cst_37 [0] : vector<16x128xi32> to vector<128xi32>
      %113 = vector.shape_cast %112 : vector<128xi32> to vector<1x128xi32>
      %114 = arith.extui %106 : vector<16x128xi1> to vector<16x128xi32>
      %cst_38 = arith.constant dense<0> : vector<128xi32>
      %115 = vector.multi_reduction <add>, %114, %cst_38 [0] : vector<16x128xi32> to vector<128xi32>
      %116 = vector.shape_cast %115 : vector<128xi32> to vector<1x128xi32>
      %c7_i32 = arith.constant 7 : i32
      %117 = vector.broadcast %c7_i32 : i32 to vector<16x128xi32>
      %118 = arith.cmpi eq, %16, %117 : vector<16x128xi32>
      %c7_i32_39 = arith.constant 7 : i32
      %119 = vector.broadcast %c7_i32_39 : i32 to vector<16x128xi32>
      %120 = arith.cmpi eq, %17, %119 : vector<16x128xi32>
      %121 = arith.andi %120, %18 : vector<16x128xi1>
      %122 = arith.extui %121 : vector<16x128xi1> to vector<16x128xi32>
      %cst_40 = arith.constant dense<0> : vector<128xi32>
      %123 = vector.multi_reduction <add>, %122, %cst_40 [0] : vector<16x128xi32> to vector<128xi32>
      %124 = vector.shape_cast %123 : vector<128xi32> to vector<1x128xi32>
      %125 = arith.extui %118 : vector<16x128xi1> to vector<16x128xi32>
      %cst_41 = arith.constant dense<0> : vector<128xi32>
      %126 = vector.multi_reduction <add>, %125, %cst_41 [0] : vector<16x128xi32> to vector<128xi32>
      %127 = vector.shape_cast %126 : vector<128xi32> to vector<1x128xi32>
      %128 = arith.extui %120 : vector<16x128xi1> to vector<16x128xi32>
      %cst_42 = arith.constant dense<0> : vector<128xi32>
      %129 = vector.multi_reduction <add>, %128, %cst_42 [0] : vector<16x128xi32> to vector<128xi32>
      %130 = vector.shape_cast %129 : vector<128xi32> to vector<1x128xi32>
      %c0_i32_43 = arith.constant 0 : i32
      %131 = vector.broadcast %c0_i32_43 : i32 to vector<16x128xi32>
      %132 = arith.cmpi sge, %17, %131 : vector<16x128xi32>
      %133 = arith.xori %18, %132 : vector<16x128xi1>
      %cst_44 = arith.constant dense<true> : vector<16x128xi1>
      %134 = arith.xori %133, %cst_44 : vector<16x128xi1>
      %135 = arith.extui %134 : vector<16x128xi1> to vector<16x128xi32>
      %cst_45 = arith.constant dense<0> : vector<128xi32>
      %136 = vector.multi_reduction <add>, %135, %cst_45 [0] : vector<16x128xi32> to vector<128xi32>
      %137 = vector.shape_cast %136 : vector<128xi32> to vector<1x128xi32>
      %138 = tpu.concatenate %26, %40, %54, %68, %82, %96, %110, %124, %29, %43, %57, %71, %85, %99, %113, %127 in 0 : vector<1x128xi32>, vector<1x128xi32>, vector<1x128xi32>, vector<1x128xi32>, vector<1x128xi32>, vector<1x128xi32>, vector<1x128xi32>, vector<1x128xi32>, vector<1x128xi32>, vector<1x128xi32>, vector<1x128xi32>, vector<1x128xi32>, vector<1x128xi32>, vector<1x128xi32>, vector<1x128xi32>, vector<1x128xi32> -> vector<16x128xi32>
      %139 = tpu.concatenate %32, %46, %60, %74, %88, %102, %116, %130, %137 in 0 : vector<1x128xi32>, vector<1x128xi32>, vector<1x128xi32>, vector<1x128xi32>, vector<1x128xi32>, vector<1x128xi32>, vector<1x128xi32>, vector<1x128xi32>, vector<1x128xi32> -> vector<9x128xi32>
      %140 = tpu.concatenate %138, %139 in 0 : vector<16x128xi32>, vector<9x128xi32> -> vector<25x128xi32>
      %141 = arith.addi %15, %140 : vector<25x128xi32>
      %c0_i32_46 = arith.constant 0 : i32
      %142 = vector.broadcast %c0_i32_46 : i32 to vector<7x128xi32>
      %143 = tpu.concatenate %141, %142 in 0 : vector<25x128xi32>, vector<7x128xi32> -> vector<32x128xi32>
      %c0_47 = arith.constant 0 : index
      %c0_48 = arith.constant 0 : index
      %c0_49 = arith.constant 0 : index
      %144 = vector.load %arg4[%c0_47, %c0_48, %c0_49] : memref<1x32x128xi32, #tpu.memory_space<vmem>>, vector<1x32x128xi32>
      %145 = vector.shape_cast %144 : vector<1x32x128xi32> to vector<32x128xi32>
      %146 = arith.addi %145, %143 : vector<32x128xi32>
      %c0_50 = arith.constant 0 : index
      %c0_51 = arith.constant 0 : index
      %c0_52 = arith.constant 0 : index
      %147 = vector.load %arg4[%c0_50, %c0_51, %c0_52] : memref<1x32x128xi32, #tpu.memory_space<vmem>>, vector<1x32x128xi32>
      %148 = vector.shape_cast %147 : vector<1x32x128xi32> to vector<32x128xi32>
      %149 = vector.shape_cast %146 : vector<32x128xi32> to vector<1x32x128xi32>
      tpu.vector_store %arg4[%c0_50, %c0_51, %c0_52], %149 {strides = array<i32>} : memref<1x32x128xi32, #tpu.memory_space<vmem>>, vector<1x32x128xi32>,
    } else {
    }
    %13 = arith.extui %10 : i1 to i32
    %c0_i32_5 = arith.constant 0 : i32
    %14 = arith.cmpi ne, %13, %c0_i32_5 : i32
    scf.if %14 {
      %15 = tpu.iota {dimensions = array<i32: 0>} : vector<16x128xi32>
      %16 = vector.broadcast %5 : i32 to vector<16x128xi32>
      %17 = arith.addi %15, %16 : vector<16x128xi32>
      %c0_i32_6 = arith.constant 0 : i32
      %18 = vector.broadcast %c0_i32_6 : i32 to vector<25x128xi32>
      %c0_i32_7 = arith.constant 0 : i32
      %c16_i32_8 = arith.constant 16 : i32
      %19 = arith.muli %c0_i32_7, %c16_i32_8 : i32
      %20 = tpu.assume_multiple %19, 16 : i32
      %c16_i32_9 = arith.constant 16 : i32
      %21 = arith.muli %c0_i32_7, %c16_i32_9 : i32
      %22 = vector.broadcast %21 : i32 to vector<16x128xi32>
      %23 = arith.addi %17, %22 : vector<16x128xi32>
      %c16_i32_10 = arith.constant 16 : i32
      %24 = vector.broadcast %c16_i32_10 : i32 to vector<16x128xi32>
      %25 = arith.cmpi slt, %23, %24 : vector<16x128xi32>
      %26 = arith.index_cast %20 : i32 to index
      %c0 = arith.constant 0 : index
      %27 = vector.load %arg2[%26, %c0] : memref<16x128xi32, #tpu.memory_space<vmem>>, vector<16x128xi32>
      %c-1_i32 = arith.constant -1 : i32
      %28 = vector.broadcast %c-1_i32 : i32 to vector<16x128xi32>
      %29 = arith.select %25, %27, %28 : vector<16x128xi1>, vector<16x128xi32>
      %30 = arith.index_cast %20 : i32 to index
      %c0_11 = arith.constant 0 : index
      %31 = vector.load %arg3[%30, %c0_11] : memref<16x128xi32, #tpu.memory_space<vmem>>, vector<16x128xi32>
      %c-1_i32_12 = arith.constant -1 : i32
      %32 = vector.broadcast %c-1_i32_12 : i32 to vector<16x128xi32>
      %33 = arith.select %25, %31, %32 : vector<16x128xi1>, vector<16x128xi32>
      %34 = arith.cmpi eq, %29, %33 : vector<16x128xi32>
      %c0_i32_13 = arith.constant 0 : i32
      %35 = vector.broadcast %c0_i32_13 : i32 to vector<16x128xi32>
      %36 = arith.cmpi eq, %29, %35 : vector<16x128xi32>
      %c0_i32_14 = arith.constant 0 : i32
      %37 = vector.broadcast %c0_i32_14 : i32 to vector<16x128xi32>
      %38 = arith.cmpi eq, %33, %37 : vector<16x128xi32>
      %39 = arith.andi %38, %34 : vector<16x128xi1>
      %40 = arith.extui %39 : vector<16x128xi1> to vector<16x128xi32>
      %cst = arith.constant dense<0> : vector<128xi32>
      %41 = vector.multi_reduction <add>, %40, %cst [0] : vector<16x128xi32> to vector<128xi32>
      %42 = vector.shape_cast %41 : vector<128xi32> to vector<1x128xi32>
      %43 = arith.extui %36 : vector<16x128xi1> to vector<16x128xi32>
      %cst_15 = arith.constant dense<0> : vector<128xi32>
      %44 = vector.multi_reduction <add>, %43, %cst_15 [0] : vector<16x128xi32> to vector<128xi32>
      %45 = vector.shape_cast %44 : vector<128xi32> to vector<1x128xi32>
      %46 = arith.extui %38 : vector<16x128xi1> to vector<16x128xi32>
      %cst_16 = arith.constant dense<0> : vector<128xi32>
      %47 = vector.multi_reduction <add>, %46, %cst_16 [0] : vector<16x128xi32> to vector<128xi32>
      %48 = vector.shape_cast %47 : vector<128xi32> to vector<1x128xi32>
      %c1_i32_17 = arith.constant 1 : i32
      %49 = vector.broadcast %c1_i32_17 : i32 to vector<16x128xi32>
      %50 = arith.cmpi eq, %29, %49 : vector<16x128xi32>
      %c1_i32_18 = arith.constant 1 : i32
      %51 = vector.broadcast %c1_i32_18 : i32 to vector<16x128xi32>
      %52 = arith.cmpi eq, %33, %51 : vector<16x128xi32>
      %53 = arith.andi %52, %34 : vector<16x128xi1>
      %54 = arith.extui %53 : vector<16x128xi1> to vector<16x128xi32>
      %cst_19 = arith.constant dense<0> : vector<128xi32>
      %55 = vector.multi_reduction <add>, %54, %cst_19 [0] : vector<16x128xi32> to vector<128xi32>
      %56 = vector.shape_cast %55 : vector<128xi32> to vector<1x128xi32>
      %57 = arith.extui %50 : vector<16x128xi1> to vector<16x128xi32>
      %cst_20 = arith.constant dense<0> : vector<128xi32>
      %58 = vector.multi_reduction <add>, %57, %cst_20 [0] : vector<16x128xi32> to vector<128xi32>
      %59 = vector.shape_cast %58 : vector<128xi32> to vector<1x128xi32>
      %60 = arith.extui %52 : vector<16x128xi1> to vector<16x128xi32>
      %cst_21 = arith.constant dense<0> : vector<128xi32>
      %61 = vector.multi_reduction <add>, %60, %cst_21 [0] : vector<16x128xi32> to vector<128xi32>
      %62 = vector.shape_cast %61 : vector<128xi32> to vector<1x128xi32>
      %c2_i32 = arith.constant 2 : i32
      %63 = vector.broadcast %c2_i32 : i32 to vector<16x128xi32>
      %64 = arith.cmpi eq, %29, %63 : vector<16x128xi32>
      %c2_i32_22 = arith.constant 2 : i32
      %65 = vector.broadcast %c2_i32_22 : i32 to vector<16x128xi32>
      %66 = arith.cmpi eq, %33, %65 : vector<16x128xi32>
      %67 = arith.andi %66, %34 : vector<16x128xi1>
      %68 = arith.extui %67 : vector<16x128xi1> to vector<16x128xi32>
      %cst_23 = arith.constant dense<0> : vector<128xi32>
      %69 = vector.multi_reduction <add>, %68, %cst_23 [0] : vector<16x128xi32> to vector<128xi32>
      %70 = vector.shape_cast %69 : vector<128xi32> to vector<1x128xi32>
      %71 = arith.extui %64 : vector<16x128xi1> to vector<16x128xi32>
      %cst_24 = arith.constant dense<0> : vector<128xi32>
      %72 = vector.multi_reduction <add>, %71, %cst_24 [0] : vector<16x128xi32> to vector<128xi32>
      %73 = vector.shape_cast %72 : vector<128xi32> to vector<1x128xi32>
      %74 = arith.extui %66 : vector<16x128xi1> to vector<16x128xi32>
      %cst_25 = arith.constant dense<0> : vector<128xi32>
      %75 = vector.multi_reduction <add>, %74, %cst_25 [0] : vector<16x128xi32> to vector<128xi32>
      %76 = vector.shape_cast %75 : vector<128xi32> to vector<1x128xi32>
      %c3_i32 = arith.constant 3 : i32
      %77 = vector.broadcast %c3_i32 : i32 to vector<16x128xi32>
      %78 = arith.cmpi eq, %29, %77 : vector<16x128xi32>
      %c3_i32_26 = arith.constant 3 : i32
      %79 = vector.broadcast %c3_i32_26 : i32 to vector<16x128xi32>
      %80 = arith.cmpi eq, %33, %79 : vector<16x128xi32>
      %81 = arith.andi %80, %34 : vector<16x128xi1>
      %82 = arith.extui %81 : vector<16x128xi1> to vector<16x128xi32>
      %cst_27 = arith.constant dense<0> : vector<128xi32>
      %83 = vector.multi_reduction <add>, %82, %cst_27 [0] : vector<16x128xi32> to vector<128xi32>
      %84 = vector.shape_cast %83 : vector<128xi32> to vector<1x128xi32>
      %85 = arith.extui %78 : vector<16x128xi1> to vector<16x128xi32>
      %cst_28 = arith.constant dense<0> : vector<128xi32>
      %86 = vector.multi_reduction <add>, %85, %cst_28 [0] : vector<16x128xi32> to vector<128xi32>
      %87 = vector.shape_cast %86 : vector<128xi32> to vector<1x128xi32>
      %88 = arith.extui %80 : vector<16x128xi1> to vector<16x128xi32>
      %cst_29 = arith.constant dense<0> : vector<128xi32>
      %89 = vector.multi_reduction <add>, %88, %cst_29 [0] : vector<16x128xi32> to vector<128xi32>
      %90 = vector.shape_cast %89 : vector<128xi32> to vector<1x128xi32>
      %c4_i32 = arith.constant 4 : i32
      %91 = vector.broadcast %c4_i32 : i32 to vector<16x128xi32>
      %92 = arith.cmpi eq, %29, %91 : vector<16x128xi32>
      %c4_i32_30 = arith.constant 4 : i32
      %93 = vector.broadcast %c4_i32_30 : i32 to vector<16x128xi32>
      %94 = arith.cmpi eq, %33, %93 : vector<16x128xi32>
      %95 = arith.andi %94, %34 : vector<16x128xi1>
      %96 = arith.extui %95 : vector<16x128xi1> to vector<16x128xi32>
      %cst_31 = arith.constant dense<0> : vector<128xi32>
      %97 = vector.multi_reduction <add>, %96, %cst_31 [0] : vector<16x128xi32> to vector<128xi32>
      %98 = vector.shape_cast %97 : vector<128xi32> to vector<1x128xi32>
      %99 = arith.extui %92 : vector<16x128xi1> to vector<16x128xi32>
      %cst_32 = arith.constant dense<0> : vector<128xi32>
      %100 = vector.multi_reduction <add>, %99, %cst_32 [0] : vector<16x128xi32> to vector<128xi32>
      %101 = vector.shape_cast %100 : vector<128xi32> to vector<1x128xi32>
      %102 = arith.extui %94 : vector<16x128xi1> to vector<16x128xi32>
      %cst_33 = arith.constant dense<0> : vector<128xi32>
      %103 = vector.multi_reduction <add>, %102, %cst_33 [0] : vector<16x128xi32> to vector<128xi32>
      %104 = vector.shape_cast %103 : vector<128xi32> to vector<1x128xi32>
      %c5_i32 = arith.constant 5 : i32
      %105 = vector.broadcast %c5_i32 : i32 to vector<16x128xi32>
      %106 = arith.cmpi eq, %29, %105 : vector<16x128xi32>
      %c5_i32_34 = arith.constant 5 : i32
      %107 = vector.broadcast %c5_i32_34 : i32 to vector<16x128xi32>
      %108 = arith.cmpi eq, %33, %107 : vector<16x128xi32>
      %109 = arith.andi %108, %34 : vector<16x128xi1>
      %110 = arith.extui %109 : vector<16x128xi1> to vector<16x128xi32>
      %cst_35 = arith.constant dense<0> : vector<128xi32>
      %111 = vector.multi_reduction <add>, %110, %cst_35 [0] : vector<16x128xi32> to vector<128xi32>
      %112 = vector.shape_cast %111 : vector<128xi32> to vector<1x128xi32>
      %113 = arith.extui %106 : vector<16x128xi1> to vector<16x128xi32>
      %cst_36 = arith.constant dense<0> : vector<128xi32>
      %114 = vector.multi_reduction <add>, %113, %cst_36 [0] : vector<16x128xi32> to vector<128xi32>
      %115 = vector.shape_cast %114 : vector<128xi32> to vector<1x128xi32>
      %116 = arith.extui %108 : vector<16x128xi1> to vector<16x128xi32>
      %cst_37 = arith.constant dense<0> : vector<128xi32>
      %117 = vector.multi_reduction <add>, %116, %cst_37 [0] : vector<16x128xi32> to vector<128xi32>
      %118 = vector.shape_cast %117 : vector<128xi32> to vector<1x128xi32>
      %c6_i32 = arith.constant 6 : i32
      %119 = vector.broadcast %c6_i32 : i32 to vector<16x128xi32>
      %120 = arith.cmpi eq, %29, %119 : vector<16x128xi32>
      %c6_i32_38 = arith.constant 6 : i32
      %121 = vector.broadcast %c6_i32_38 : i32 to vector<16x128xi32>
      %122 = arith.cmpi eq, %33, %121 : vector<16x128xi32>
      %123 = arith.andi %122, %34 : vector<16x128xi1>
      %124 = arith.extui %123 : vector<16x128xi1> to vector<16x128xi32>
      %cst_39 = arith.constant dense<0> : vector<128xi32>
      %125 = vector.multi_reduction <add>, %124, %cst_39 [0] : vector<16x128xi32> to vector<128xi32>
      %126 = vector.shape_cast %125 : vector<128xi32> to vector<1x128xi32>
      %127 = arith.extui %120 : vector<16x128xi1> to vector<16x128xi32>
      %cst_40 = arith.constant dense<0> : vector<128xi32>
      %128 = vector.multi_reduction <add>, %127, %cst_40 [0] : vector<16x128xi32> to vector<128xi32>
      %129 = vector.shape_cast %128 : vector<128xi32> to vector<1x128xi32>
      %130 = arith.extui %122 : vector<16x128xi1> to vector<16x128xi32>
      %cst_41 = arith.constant dense<0> : vector<128xi32>
      %131 = vector.multi_reduction <add>, %130, %cst_41 [0] : vector<16x128xi32> to vector<128xi32>
      %132 = vector.shape_cast %131 : vector<128xi32> to vector<1x128xi32>
      %c7_i32 = arith.constant 7 : i32
      %133 = vector.broadcast %c7_i32 : i32 to vector<16x128xi32>
      %134 = arith.cmpi eq, %29, %133 : vector<16x128xi32>
      %c7_i32_42 = arith.constant 7 : i32
      %135 = vector.broadcast %c7_i32_42 : i32 to vector<16x128xi32>
      %136 = arith.cmpi eq, %33, %135 : vector<16x128xi32>
      %137 = arith.andi %136, %34 : vector<16x128xi1>
      %138 = arith.extui %137 : vector<16x128xi1> to vector<16x128xi32>
      %cst_43 = arith.constant dense<0> : vector<128xi32>
      %139 = vector.multi_reduction <add>, %138, %cst_43 [0] : vector<16x128xi32> to vector<128xi32>
      %140 = vector.shape_cast %139 : vector<128xi32> to vector<1x128xi32>
      %141 = arith.extui %134 : vector<16x128xi1> to vector<16x128xi32>
      %cst_44 = arith.constant dense<0> : vector<128xi32>
      %142 = vector.multi_reduction <add>, %141, %cst_44 [0] : vector<16x128xi32> to vector<128xi32>
      %143 = vector.shape_cast %142 : vector<128xi32> to vector<1x128xi32>
      %144 = arith.extui %136 : vector<16x128xi1> to vector<16x128xi32>
      %cst_45 = arith.constant dense<0> : vector<128xi32>
      %145 = vector.multi_reduction <add>, %144, %cst_45 [0] : vector<16x128xi32> to vector<128xi32>
      %146 = vector.shape_cast %145 : vector<128xi32> to vector<1x128xi32>
      %c0_i32_46 = arith.constant 0 : i32
      %147 = vector.broadcast %c0_i32_46 : i32 to vector<16x128xi32>
      %148 = arith.cmpi sge, %33, %147 : vector<16x128xi32>
      %149 = arith.xori %34, %148 : vector<16x128xi1>
      %cst_47 = arith.constant dense<true> : vector<16x128xi1>
      %150 = arith.xori %149, %cst_47 : vector<16x128xi1>
      %151 = arith.extui %150 : vector<16x128xi1> to vector<16x128xi32>
      %cst_48 = arith.constant dense<0> : vector<128xi32>
      %152 = vector.multi_reduction <add>, %151, %cst_48 [0] : vector<16x128xi32> to vector<128xi32>
      %153 = vector.shape_cast %152 : vector<128xi32> to vector<1x128xi32>
      %154 = tpu.concatenate %42, %56, %70, %84, %98, %112, %126, %140, %45, %59, %73, %87, %101, %115, %129, %143 in 0 : vector<1x128xi32>, vector<1x128xi32>, vector<1x128xi32>, vector<1x128xi32>, vector<1x128xi32>, vector<1x128xi32>, vector<1x128xi32>, vector<1x128xi32>, vector<1x128xi32>, vector<1x128xi32>, vector<1x128xi32>, vector<1x128xi32>, vector<1x128xi32>, vector<1x128xi32>, vector<1x128xi32>, vector<1x128xi32> -> vector<16x128xi32>
      %155 = tpu.concatenate %48, %62, %76, %90, %104, %118, %132, %146, %153 in 0 : vector<1x128xi32>, vector<1x128xi32>, vector<1x128xi32>, vector<1x128xi32>, vector<1x128xi32>, vector<1x128xi32>, vector<1x128xi32>, vector<1x128xi32>, vector<1x128xi32> -> vector<9x128xi32>
      %156 = tpu.concatenate %154, %155 in 0 : vector<16x128xi32>, vector<9x128xi32> -> vector<25x128xi32>
      %157 = arith.addi %18, %156 : vector<25x128xi32>
      %c1_i32_49 = arith.constant 1 : i32
      %c0_i32_50 = arith.constant 0 : i32
      %158 = vector.broadcast %c0_i32_50 : i32 to vector<7x128xi32>
      %159 = tpu.concatenate %157, %158 in 0 : vector<25x128xi32>, vector<7x128xi32> -> vector<32x128xi32>
      %c0_51 = arith.constant 0 : index
      %c0_52 = arith.constant 0 : index
      %c0_53 = arith.constant 0 : index
      %160 = vector.load %arg4[%c0_51, %c0_52, %c0_53] : memref<1x32x128xi32, #tpu.memory_space<vmem>>, vector<1x32x128xi32>
      %161 = vector.shape_cast %160 : vector<1x32x128xi32> to vector<32x128xi32>
      %162 = arith.addi %161, %159 : vector<32x128xi32>
      %c0_54 = arith.constant 0 : index
      %c0_55 = arith.constant 0 : index
      %c0_56 = arith.constant 0 : index
      %163 = vector.load %arg4[%c0_54, %c0_55, %c0_56] : memref<1x32x128xi32, #tpu.memory_space<vmem>>, vector<1x32x128xi32>
      %164 = vector.shape_cast %163 : vector<1x32x128xi32> to vector<32x128xi32>
      %165 = vector.shape_cast %162 : vector<32x128xi32> to vector<1x32x128xi32>
      tpu.vector_store %arg4[%c0_54, %c0_55, %c0_56], %165 {strides = array<i32>} : memref<1x32x128xi32, #tpu.memory_space<vmem>>, vector<1x32x128xi32>,
    } else {
    }
    return
  }
  func.func @transform_0(%arg0: i32, %arg1: i32) -> (i32, i32) {
    %c1_i32 = arith.constant 1 : i32
    %0 = arith.muli %arg0, %c1_i32 : i32
    %1 = arith.addi %0, %arg1 : i32
    %c0_i32 = arith.constant 0 : i32
    %2 = arith.minsi %1, %c0_i32 : i32
    %c0_i32_0 = arith.constant 0 : i32
    %c0_i32_1 = arith.constant 0 : i32
    return %2, %c0_i32_0 : i32, i32
  }
  func.func @transform_1(%arg0: i32, %arg1: i32) -> (i32, i32) {
    %c1_i32 = arith.constant 1 : i32
    %0 = arith.muli %arg0, %c1_i32 : i32
    %1 = arith.addi %0, %arg1 : i32
    %c0_i32 = arith.constant 0 : i32
    %2 = arith.minsi %1, %c0_i32 : i32
    %c0_i32_0 = arith.constant 0 : i32
    %c0_i32_1 = arith.constant 0 : i32
    return %2, %c0_i32_0 : i32, i32
  }
  func.func @transform_2(%arg0: i32, %arg1: i32) -> (i32, i32, i32) {
    %c0_i32 = arith.constant 0 : i32
    %c0_i32_0 = arith.constant 0 : i32
    %c0_i32_1 = arith.constant 0 : i32
    return %arg0, %c0_i32, %c0_i32_0 : i32, i32, i32
  }
}

</mosaic_0001>

<bundles_post_ra>
// kernel: tpu_custom_call.1
= control target key start
LH: loop header
LB: loop body
LE: loop exit
PB: predicated region body
PF: predicated region fallthrough
CT: control target
= control target key end

     0   :  { %7 = vsyncpa [#allocation3], 0  ;;  %s1145_s0 = inlined_call_operand.hbm [shape: s32[16,128], index: 0, kind: input, shape index: {}]   ;;  %s1146_s1 = inlined_call_operand.hbm [shape: s32[16,128], index: 1, kind: input, shape index: {}]   ;;  %s1147_s2 = inlined_call_operand.hbm [shape: s32[1,32,128], index: 2, kind: output, shape index: {}]  }
   0x1   :  { %8 = vsyncpa [#allocation6], 0 }
   0x2   :  { %9 = vsyncpa [#allocation4], 0  ;;  %s846_s9 = smov [#allocation2]   ;;  %s774_s13 = scalar_lea.hbm %s1145_s0, 256 }
   0x3   :  { %s21_s10 = sshll.u32 %s846_s9, 4  ;;  %p775_p0 = scmp.ne.s32.totalorder %s1145_s0, %s774_s13  ;;  %s22_s10 = int_to_ptr.vmem [resolvable:$true] %s21_s10 }
   0x4   :  { %p778_p1 = scmp.lt.u32.totalorder %s774_s13, %s1145_s0 }
   0x6   :  { %p780_p2 = pnand %p778_p1, %p775_p0 }
   0x8   :  { %783 = shalt.err (!%p780_p2)
}
   0x9   :  { %s784_s18 = scalar_lea.vmem %s22_s10, 256  ;;  %p789_p4 = scmp.lt.s32.totalorder %s22_s10, %s22_s10 }
   0xa   :  { %p785_p3 = scmp.ne.s32.totalorder %s22_s10, %s784_s18  ;;  %p790_p5 = scmp.lt.s32.totalorder %s784_s18, %s784_s18 }
   0xc   :  { %p791_p6 = por %p790_p5, %p789_p4 }
   0xe   :  { %p792_p7 = pnand %p791_p6, %p785_p3 }
  0x10   :  { %795 = shalt.err (!%p792_p7)
}
  0x11   :  { %s847_s19 = smov 128   ;;  %s848_s20 = smov 8  }
  0x12   :  { %27 = dma.hbm_to_vmem [thread:$0]  %s1145_s0, 256, %s22_s10, [#allocation3], %s847_s19, %s847_s19, %s848_s20  }
  0x13   :  { %s849_s23 = smov [#allocation5]   ;;  %s796_s27 = scalar_lea.hbm %s1146_s1, 256 }
  0x14   :  { %s39_s24 = sshll.u32 %s849_s23, 4  ;;  %p797_p8 = scmp.ne.s32.totalorder %s1146_s1, %s796_s27  ;;  %s40_s24 = int_to_ptr.vmem [resolvable:$true] %s39_s24 }
  0x15   :  { %p800_p9 = scmp.lt.u32.totalorder %s796_s27, %s1146_s1 }
  0x17   :  { %p802_p10 = pnand %p800_p9, %p797_p8 }
  0x19   :  { %805 = shalt.err (!%p802_p10)
}
  0x1a   :  { %s806_s4 = scalar_lea.vmem %s40_s24, 256  ;;  %p811_p12 = scmp.lt.s32.totalorder %s40_s24, %s40_s24 }
  0x1b   :  { %p807_p11 = scmp.ne.s32.totalorder %s40_s24, %s806_s4  ;;  %p812_p13 = scmp.lt.s32.totalorder %s806_s4, %s806_s4 }
  0x1d   :  { %p813_p0 = por %p812_p13, %p811_p12 }
  0x1f   :  { %p814_p1 = pnand %p813_p0, %p807_p11 }
  0x21   :  { %817 = shalt.err (!%p814_p1)
}
  0x22   :  { %45 = dma.hbm_to_vmem [thread:$0]  %s1146_s1, 256, %s40_s24, [#allocation6], %s847_s19, %s847_s19, %s848_s20  }
  0x23   :  { %840 = dma.done.wait [#allocation3], 256  }
  0x24   :  { %841 = vsyncadd [#allocation3], 4294967040 }
  0x25   :  { %842 = dma.done.wait [#allocation6], 256  }
  0x26   :  { %843 = vsyncadd [#allocation6], 4294967040  ;;  %v898_v0 = vld [vmem:[#allocation2] sm:$0xff]  ;;  %v900_v1 = vld [vmem:[#allocation2 + $0x8] sm:$0xff]  ;;  %v850_v6 = vmov 0   ;;  %s852_s1 = smov [#allocation7]  }
  0x27   :  { %v902_v2 = vld [vmem:[#allocation5] sm:$0xff]  ;;  %v904_v3 = vld [vmem:[#allocation5 + $0x8] sm:$0xff]  ;;  %vm85_vm14 = vcmp.eq.s32.totalorder %v898_v0, 0  ;;  %s750_s6 = sshll.u32 %s852_s1, 4  ;;  %s751_s6 = int_to_ptr.vmem [resolvable:$true] %s750_s6 }
  0x28   :  { %vm908_vm0 = vcmp.eq.s32.totalorder %v898_v0, %v902_v2  ;;  %vm1149_vm1 = vcmp.eq.s32.totalorder %v902_v2, 0  ;;  %vm1150_vm2 = vcmp.eq.s32.totalorder %v902_v2, 1  ;;  %vm1151_vm3 = vcmp.eq.s32.totalorder %v902_v2, 2  ;;  %s818_s7 = scalar_lea.vmem %s751_s6, 512  ;;  %p823_p3 = scmp.lt.s32.totalorder %s751_s6, %s751_s6 }
  0x29   :  { %vm917_vm4 = vcmp.eq.s32.totalorder %v900_v1, %v904_v3  ;;  %vm1148_vm5 = vcmp.eq.s32.totalorder %v904_v3, 0  ;;  %vm89_vm6 = vmand %vm1149_vm1, %vm908_vm0  ;;  %vm1152_vm7 = vcmp.eq.s32.totalorder %v904_v3, 1  ;;  %vm154_vm8 = vcmp.eq.s32.totalorder %v904_v3, 2  ;;  %p819_p2 = scmp.ne.s32.totalorder %s751_s6, %s818_s7  ;;  %p824_p4 = scmp.lt.s32.totalorder %s818_s7, %s818_s7 }
  0x2a   :  { %vm90_vm9 = vmand %vm1148_vm5, %vm917_vm4  ;;  %v91_v7 = vsel %vm89_vm6, 1, %v850_v6  ;;  %vm186_vm10 = vcmp.eq.s32.totalorder %v902_v2, 3  ;;  %vm1154_vm11 = vcmp.eq.s32.totalorder %v904_v3, 3  ;;  %vm1153_vm12 = vcmp.eq.s32.totalorder %v902_v2, 4 }
  0x2b   :  { %v92_v8 = vsel %vm90_vm9, 1, %v850_v6  ;;  %vm122_vm13 = vmand %vm1150_vm2, %vm908_vm0  ;;  %vm1158_vm9 = vcmp.eq.s32.totalorder %v902_v2, 6  ;;  %vm1157_vm1 = vcmp.eq.s32.totalorder %v904_v3, 6  ;;  %vm1156_vm5 = vcmp.eq.s32.totalorder %v902_v2, 7  ;;  %p825_p5 = por %p824_p4, %p823_p3 }
  0x2c   :  { %v93_v9 = vadd.s32 %v92_v8, %v91_v7  ;;  %vm123_vm6 = vmand %vm1152_vm7, %vm917_vm4  ;;  %v124_v10 = vsel %vm122_vm13, 1, %v850_v6  ;;  %vm1155_vm15 = vcmp.eq.s32.totalorder %v904_v3, 7  ;;  %v100_v16 = vsel %vm85_vm14, 1, %v850_v6 }
  0x2d   :  { %v125_v11 = vsel %vm123_vm6, 1, %v850_v6  ;;  %vm155_vm2 = vmand %vm1151_vm3, %vm908_vm0  ;;  %vm86_vm6 = vcmp.eq.s32.totalorder %v900_v1, 0  ;;  %vm118_vm7 = vcmp.eq.s32.totalorder %v898_v0, 1  ;;  %p826_p6 = pnand %p825_p5, %p819_p2 }
  0x2e   :  { %v94_v12 = vrot.slane %v93_v9, 4  ;;  %v126_v13 = vadd.s32 %v125_v11, %v124_v10  ;;  %vm156_vm13 = vmand %vm154_vm8, %vm917_vm4  ;;  %v157_v14 = vsel %vm155_vm2, 1, %v850_v6  ;;  %v101_v17 = vsel %vm86_vm6, 1, %v850_v6 }
  0x2f   :  { %v158_v15 = vsel %vm156_vm13, 1, %v850_v6  ;;  %vm188_vm3 = vmand %vm186_vm10, %vm908_vm0  ;;  %vm364_vm13 = vcmask 1040384   ;;  %v102_v23 = vadd.s32 %v101_v17, %v100_v16  ;;  %vm119_vm6 = vcmp.eq.s32.totalorder %v900_v1, 1 }
  0x30   :  { %v95_v18 = vadd.s32 %v94_v12, %v93_v9  ;;  %v127_v19 = vrot.slane %v126_v13, 4  ;;  %v159_v20 = vadd.s32 %v158_v15, %v157_v14  ;;  %vm189_vm2 = vmand %vm1154_vm11, %vm917_vm4  ;;  %v190_v21 = vsel %vm188_vm3, 1, %v850_v6 }
  0x31   :  { %v191_v22 = vsel %vm189_vm2, 1, %v850_v6  ;;  %vm221_vm14 = vmand %vm1153_vm12, %vm908_vm0  ;;  %v985_v24 = vsel %vm118_vm7, 1, %v850_v6  ;;  %vm1163_vm3 = vcmp.eq.s32.totalorder %v904_v3, 4  ;;  %vm1164_vm12 = vcmp.eq.s32.totalorder %v902_v2, 5 }
  0x32   :  { %v96_v25 = vrot.slane %v95_v18, 2  ;;  %v128_v26 = vadd.s32 %v127_v19, %v126_v13  ;;  %v160_v27 = vrot.slane %v159_v20, 4  ;;  %v192_v28 = vadd.s32 %v191_v22, %v190_v21  ;;  %vm222_vm2 = vmand %vm1163_vm3, %vm917_vm4 }
  0x33   :  { %v223_v29 = vsel %vm221_vm14, 1, %v850_v6  ;;  %v224_v30 = vsel %vm222_vm2, 1, %v850_v6  ;;  %vm254_vm11 = vmand %vm1164_vm12, %vm908_vm0  ;;  %vm366_vm7 = vcmask 1041408   ;;  %v103_v31 = vrot.slane %v102_v23, 4 }
  0x34   :  { %v134_v32 = vsel %vm119_vm6, 1, %v850_v6  ;;  %v97_v33 = vadd.s32 %v96_v25, %v95_v18  ;;  %v129_v34 = vrot.slane %v128_v26, 2  ;;  %v161_v35 = vadd.s32 %v160_v27, %v159_v20  ;;  %vm287_vm12 = vmand %vm1158_vm9, %vm908_vm0 }
  0x35   :  { %v193_v36 = vrot.slane %v192_v28, 4  ;;  %vm1165_vm3 = vcmp.eq.s32.totalorder %v904_v3, 5  ;;  %v225_v37 = vadd.s32 %v224_v30, %v223_v29  ;;  %v256_v38 = vsel %vm254_vm11, 1, %v850_v6  ;;  %vm288_vm2 = vmand %vm1157_vm1, %vm917_vm4 }
  0x36   :  { %vm255_vm14 = vmand %vm1165_vm3, %vm917_vm4  ;;  %vm368_vm6 = vcmask 1042432   ;;  %v104_v40 = vadd.s32 %v103_v31, %v102_v23  ;;  %v98_v41 = vrot.slane %v97_v33, 1  ;;  %v130_v42 = vadd.s32 %v129_v34, %v128_v26 }
  0x37   :  { %v257_v39 = vsel %vm255_vm14, 1, %v850_v6  ;;  %v162_v43 = vrot.slane %v161_v35, 2  ;;  %v194_v44 = vadd.s32 %v193_v36, %v192_v28  ;;  %v226_v45 = vrot.slane %v225_v37, 4  ;;  %vm320_vm11 = vmand %vm1156_vm5, %vm908_vm0 }
  0x38   :  { %v258_v46 = vadd.s32 %v257_v39, %v256_v38  ;;  %v289_v47 = vsel %vm287_vm12, 1, %v850_v6  ;;  %v290_v48 = vsel %vm288_vm2, 1, %v850_v6  ;;  %v99_v49 = vadd.s32 %v98_v41, %v97_v33  ;;  %vm321_vm3 = vmand %vm1155_vm15, %vm917_vm4 }
  0x39   :  { %v131_v50 = vrot.slane %v130_v42, 1  ;;  %v163_v51 = vadd.s32 %v162_v43, %v161_v35  ;;  %v195_v52 = vrot.slane %v194_v44, 2  ;;  %vm370_vm14 = vcmask 1043456  }
  0x3a   :  { %v227_v53 = vadd.s32 %v226_v45, %v225_v37  ;;  %v259_v54 = vrot.slane %v258_v46, 4  ;;  %v291_v55 = vadd.s32 %v290_v48, %v289_v47  ;;  %v322_v56 = vsel %vm320_vm11, 1, %v850_v6 }
  0x3b   :  { %v132_v57 = vadd.s32 %v131_v50, %v130_v42  ;;  %v164_v58 = vrot.slane %v163_v51, 1  ;;  %v196_v59 = vadd.s32 %v195_v52, %v194_v44  ;;  %v323_v60 = vsel %vm321_vm3, 1, %v850_v6 }
  0x3c   :  { %vm372_vm12 = vcmask 1044480   ;;  %v228_v61 = vrot.slane %v227_v53, 2  ;;  %v260_v62 = vadd.s32 %v259_v54, %v258_v46  ;;  %v292_v63 = vrot.slane %v291_v55, 4 }
  0x3d   :  { %v324_v7 = vadd.s32 %v323_v60, %v322_v56  ;;  %v165_v8 = vadd.s32 %v164_v58, %v163_v51  ;;  %v197_v9 = vrot.slane %v196_v59, 1  ;;  %v365_v10 = vsel %vm364_vm13, %v99_v49, %v132_v57 }
  0x3e   :  { %vm374_vm2 = vcmask 1045504   ;;  %v105_v11 = vrot.slane %v104_v40, 2  ;;  %v229_v12 = vadd.s32 %v228_v61, %v227_v53  ;;  %v261_v13 = vrot.slane %v260_v62, 2 }
  0x3f   :  { %v293_v14 = vadd.s32 %v292_v63, %v291_v55  ;;  %v325_v15 = vrot.slane %v324_v7, 4  ;;  %v198_v16 = vadd.s32 %v197_v9, %v196_v59  ;;  %v367_v17 = vsel %vm366_vm7, %v365_v10, %v165_v8 }
  0x40   :  { %vm376_vm11 = vcmask 1046528   ;;  %v106_v18 = vadd.s32 %v105_v11, %v104_v40  ;;  %v135_v19 = vadd.s32 %v134_v32, %v985_v24  ;;  %v230_v20 = vrot.slane %v229_v12, 1 }
  0x41   :  { %v262_v21 = vadd.s32 %v261_v13, %v260_v62  ;;  %v294_v22 = vrot.slane %v293_v14, 2  ;;  %v326_v23 = vadd.s32 %v325_v15, %v324_v7  ;;  %v369_v25 = vsel %vm368_vm6, %v367_v17, %v198_v16 }
  0x42   :  { %v107_v26 = vrot.slane %v106_v18, 1  ;;  %v136_v27 = vrot.slane %v135_v19, 4  ;;  %vm151_vm3 = vcmp.eq.s32.totalorder %v898_v0, 2  ;;  %v231_v28 = vadd.s32 %v230_v20, %v229_v12 }
  0x43   :  { %v263_v29 = vrot.slane %v262_v21, 1  ;;  %v295_v30 = vadd.s32 %v294_v22, %v293_v14  ;;  %v327_v31 = vrot.slane %v326_v23, 2  ;;  %vm152_vm15 = vcmp.eq.s32.totalorder %v900_v1, 2 }
  0x44   :  { %v1029_v33 = vadd.s32 %v107_v26, %v106_v18  ;;  %v137_v34 = vadd.s32 %v136_v27, %v135_v19  ;;  %v166_v24 = vsel %vm151_vm3, 1, %v850_v6  ;;  %v371_v37 = vsel %vm370_vm14, %v369_v25, %v231_v28 }
  0x45   :  { %v264_v32 = vadd.s32 %v263_v29, %v262_v21  ;;  %v296_v35 = vrot.slane %v295_v30, 1  ;;  %v328_v36 = vadd.s32 %v327_v31, %v326_v23  ;;  %v167_v39 = vsel %vm152_vm15, 1, %v850_v6 }
  0x46   :  { %v138_v38 = vrot.slane %v137_v34, 2  ;;  %vm184_vm5 = vcmp.eq.s32.totalorder %v898_v0, 3  ;;  %vm185_vm1 = vcmp.eq.s32.totalorder %v900_v1, 3  ;;  %v168_v43 = vadd.s32 %v167_v39, %v166_v24 }
  0x47   :  { %v297_v40 = vadd.s32 %v296_v35, %v295_v30  ;;  %v329_v41 = vrot.slane %v328_v36, 1  ;;  %v373_v42 = vsel %vm372_vm12, %v371_v37, %v264_v32  ;;  %v199_v45 = vsel %vm184_vm5, 1, %v850_v6 }
  0x48   :  { %v139_v44 = vadd.s32 %v138_v38, %v137_v34  ;;  %v200_v46 = vsel %vm185_vm1, 1, %v850_v6  ;;  %vm217_vm3 = vcmp.eq.s32.totalorder %v898_v0, 4  ;;  %v169_v49 = vrot.slane %v168_v43, 4 }
  0x49   :  { %v330_v47 = vadd.s32 %v329_v41, %v328_v36  ;;  %v375_v48 = vsel %vm374_vm2, %v373_v42, %v297_v40  ;;  %v201_v50 = vadd.s32 %v200_v46, %v199_v45  ;;  %vm218_vm15 = vcmp.eq.s32.totalorder %v900_v1, 4 }
  0x4a   :  { %v140_v51 = vrot.slane %v139_v44, 1  ;;  %v232_v52 = vsel %vm217_vm3, 1, %v850_v6  ;;  %vm250_vm9 = vcmp.eq.s32.totalorder %v898_v0, 5  ;;  %v170_v54 = vadd.s32 %v169_v49, %v168_v43 }
  0x4b   :  { %v377_v53 = vsel %vm376_vm11, %v375_v48, %v330_v47  ;;  %v202_v55 = vrot.slane %v201_v50, 4  ;;  %v233_v56 = vsel %vm218_vm15, 1, %v850_v6  ;;  %vm251_vm1 = vcmp.eq.s32.totalorder %v900_v1, 5 }
  0x4c   :  { %v141_v57 = vadd.s32 %v140_v51, %v139_v44  ;;  %v234_v58 = vadd.s32 %v233_v56, %v232_v52  ;;  %v171_v59 = vrot.slane %v170_v54, 2  ;;  %v265_v61 = vsel %vm250_vm9, 1, %v850_v6  ;;  %401 = vst [vmem:[#allocation7] sm:$0xff] %v377_v53 }
  0x4d   :  { %v203_v60 = vadd.s32 %v202_v55, %v201_v50  ;;  %v266_v62 = vsel %vm251_vm1, 1, %v850_v6  ;;  %vm283_vm5 = vcmp.eq.s32.totalorder %v898_v0, 6  ;;  %vm284_vm3 = vcmp.eq.s32.totalorder %v900_v1, 6 }
  0x4e   :  { %v235_v63 = vrot.slane %v234_v58, 4  ;;  %v267_v7 = vadd.s32 %v266_v62, %v265_v61  ;;  %v172_v8 = vadd.s32 %v171_v59, %v170_v54  ;;  %v298_v10 = vsel %vm283_vm5, 1, %v850_v6 }
  0x4f   :  { %v204_v9 = vrot.slane %v203_v60, 2  ;;  %v299_v11 = vsel %vm284_vm3, 1, %v850_v6  ;;  %vm316_vm9 = vcmp.eq.s32.totalorder %v898_v0, 7  ;;  %vm317_vm15 = vcmp.eq.s32.totalorder %v900_v1, 7 }
  0x50   :  { %v236_v12 = vadd.s32 %v235_v63, %v234_v58  ;;  %v268_v13 = vrot.slane %v267_v7, 4  ;;  %v300_v14 = vadd.s32 %v299_v11, %v298_v10  ;;  %v173_v15 = vrot.slane %v172_v8, 1 }
  0x51   :  { %v205_v16 = vadd.s32 %v204_v9, %v203_v60  ;;  %v331_v17 = vsel %vm316_vm9, 1, %v850_v6  ;;  %v332_v21 = vsel %vm317_vm15, 1, %v850_v6  ;;  %v378_v26 = vsel %vm364_vm13, %v1029_v33, %v141_v57 }
  0x52   :  { %v237_v18 = vrot.slane %v236_v12, 2  ;;  %v269_v19 = vadd.s32 %v268_v13, %v267_v7  ;;  %v301_v20 = vrot.slane %v300_v14, 4  ;;  %v174_v22 = vadd.s32 %v173_v15, %v172_v8 }
  0x53   :  { %v206_v23 = vrot.slane %v205_v16, 1  ;;  %v333_v25 = vadd.s32 %v332_v21, %v331_v17  ;;  %vm1166_vm1 = vcmp.eq.s32.totalorder %v902_v2, 0  ;;  %vm1167_vm5 = vcmp.eq.s32.totalorder %v904_v3, 0 }
  0x54   :  { %v238_v27 = vadd.s32 %v237_v18, %v236_v12  ;;  %v270_v28 = vrot.slane %v269_v19, 2  ;;  %v302_v0 = vadd.s32 %v301_v20, %v300_v14  ;;  %v109_v1 = vsel %vm1166_vm1, 1, %v850_v6 }
  0x55   :  { %v207_v29 = vadd.s32 %v206_v23, %v205_v16  ;;  %v334_v30 = vrot.slane %v333_v25, 4  ;;  %v379_v31 = vsel %vm366_vm7, %v378_v26, %v174_v22  ;;  %v110_v34 = vsel %vm1167_vm5, 1, %v850_v6 }
  0x56   :  { %v239_v24 = vrot.slane %v238_v27, 1  ;;  %v271_v32 = vadd.s32 %v270_v28, %v269_v19  ;;  %v303_v35 = vrot.slane %v302_v0, 2  ;;  %v111_v36 = vadd.s32 %v110_v34, %v109_v1 }
  0x57   :  { %v335_v33 = vadd.s32 %v334_v30, %v333_v25  ;;  %v380_v37 = vsel %vm368_vm6, %v379_v31, %v207_v29  ;;  %vm1168_vm3 = vcmp.eq.s32.totalorder %v902_v2, 1  ;;  %vm1169_vm9 = vcmp.eq.s32.totalorder %v904_v3, 1 }
  0x58   :  { %v142_v38 = vsel %vm1168_vm3, 1, %v850_v6  ;;  %v143_v39 = vsel %vm1169_vm9, 1, %v850_v6  ;;  %v240_v40 = vadd.s32 %v239_v24, %v238_v27  ;;  %v272_v41 = vrot.slane %v271_v32, 1 }
  0x59   :  { %v304_v42 = vadd.s32 %v303_v35, %v302_v0  ;;  %v112_v43 = vrot.slane %v111_v36, 4  ;;  %v336_v44 = vrot.slane %v335_v33, 2  ;;  %v144_v45 = vadd.s32 %v143_v39, %v142_v38 }
  0x5a   :  { %vm1170_vm15 = vcmp.eq.s32.totalorder %v902_v2, 2  ;;  %v176_v47 = vsel %vm154_vm8, 1, %v850_v6  ;;  %v273_v48 = vadd.s32 %v272_v41, %v271_v32  ;;  %v381_v50 = vsel %vm370_vm14, %v380_v37, %v240_v40 }
  0x5b   :  { %v175_v46 = vsel %vm1170_vm15, 1, %v850_v6  ;;  %v305_v49 = vrot.slane %v304_v42, 1  ;;  %v113_v51 = vadd.s32 %v112_v43, %v111_v36  ;;  %v337_v52 = vadd.s32 %v336_v44, %v335_v33 }
  0x5c   :  { %v145_v53 = vrot.slane %v144_v45, 4  ;;  %v177_v54 = vadd.s32 %v176_v47, %v175_v46  ;;  %v208_v55 = vsel %vm186_vm10, 1, %v850_v6  ;;  %v382_v57 = vsel %vm372_vm12, %v381_v50, %v273_v48 }
  0x5d   :  { %v306_v56 = vadd.s32 %v305_v49, %v304_v42  ;;  %v114_v58 = vrot.slane %v113_v51, 2  ;;  %vm1171_vm1 = vcmp.eq.s32.totalorder %v904_v3, 3  ;;  %v338_v60 = vrot.slane %v337_v52, 1 }
  0x5e   :  { %v209_v59 = vsel %vm1171_vm1, 1, %v850_v6  ;;  %v146_v61 = vadd.s32 %v145_v53, %v144_v45  ;;  %v178_v62 = vrot.slane %v177_v54, 4  ;;  %vm1172_vm8 = vcmp.eq.s32.totalorder %v902_v2, 4 }
  0x5f   :  { %v210_v63 = vadd.s32 %v209_v59, %v208_v55  ;;  %v383_v7 = vsel %vm374_vm2, %v382_v57, %v306_v56  ;;  %v115_v8 = vadd.s32 %v114_v58, %v113_v51  ;;  %v241_v9 = vsel %vm1172_vm8, 1, %v850_v6 }
  0x60   :  { %vm1173_vm10 = vcmp.eq.s32.totalorder %v904_v3, 4  ;;  %v339_v11 = vadd.s32 %v338_v60, %v337_v52  ;;  %v147_v12 = vrot.slane %v146_v61, 2  ;;  %v179_v13 = vadd.s32 %v178_v62, %v177_v54 }
  0x61   :  { %v242_v10 = vsel %vm1173_vm10, 1, %v850_v6  ;;  %v211_v14 = vrot.slane %v210_v63, 4  ;;  %v116_v15 = vrot.slane %v115_v8, 1  ;;  %vm1174_vm5 = vcmp.eq.s32.totalorder %v902_v2, 5 }
  0x62   :  { %v243_v16 = vadd.s32 %v242_v10, %v241_v9  ;;  %v274_v17 = vsel %vm1174_vm5, 1, %v850_v6  ;;  %vm1175_vm3 = vcmp.eq.s32.totalorder %v904_v3, 5  ;;  %v384_v19 = vsel %vm376_vm11, %v383_v7, %v339_v11 }
  0x63   :  { %v275_v18 = vsel %vm1175_vm3, 1, %v850_v6  ;;  %v148_v20 = vadd.s32 %v147_v12, %v146_v61  ;;  %v180_v21 = vrot.slane %v179_v13, 2  ;;  %v212_v22 = vadd.s32 %v211_v14, %v210_v63  ;;  %402 = vst [vmem:[#allocation7 + $0x8] sm:$0xff] %v384_v19 }
  0x64   :  { %v117_v23 = vadd.s32 %v116_v15, %v115_v8  ;;  %v244_v25 = vrot.slane %v243_v16, 4  ;;  %v276_v26 = vadd.s32 %v275_v18, %v274_v17  ;;  %vm1176_vm9 = vcmp.eq.s32.totalorder %v902_v2, 6 }
  0x65   :  { %v149_v27 = vrot.slane %v148_v20, 1  ;;  %v181_v28 = vadd.s32 %v180_v21, %v179_v13  ;;  %v213_v0 = vrot.slane %v212_v22, 2  ;;  %v307_v1 = vsel %vm1176_vm9, 1, %v850_v6 }
  0x66   :  { %v245_v29 = vadd.s32 %v244_v25, %v243_v16  ;;  %v277_v30 = vrot.slane %v276_v26, 4  ;;  %vm1177_vm15 = vcmp.eq.s32.totalorder %v904_v3, 6  ;;  %vm1178_vm1 = vcmp.eq.s32.totalorder %v902_v2, 7 }
  0x67   :  { %v308_v31 = vsel %vm1177_vm15, 1, %v850_v6  ;;  %v340_v34 = vsel %vm1178_vm1, 1, %v850_v6  ;;  %v150_v24 = vadd.s32 %v149_v27, %v148_v20  ;;  %v182_v32 = vrot.slane %v181_v28, 1 }
  0x68   :  { %v214_v35 = vadd.s32 %v213_v0, %v212_v22  ;;  %v309_v36 = vadd.s32 %v308_v31, %v307_v1  ;;  %v246_v33 = vrot.slane %v245_v29, 2  ;;  %v278_v37 = vadd.s32 %v277_v30, %v276_v26 }
  0x69   :  { %vm1179_vm8 = vcmp.eq.s32.totalorder %v904_v3, 7  ;;  %vm349_vm10 = vcmp.ge.s32.totalorder %v902_v2, 0  ;;  %v183_v39 = vadd.s32 %v182_v32, %v181_v28  ;;  %v385_v45 = vsel %vm364_vm13, %v117_v23, %v150_v24 }
  0x6a   :  { %v341_v38 = vsel %vm1179_vm8, 1, %v850_v6  ;;  %v215_v40 = vrot.slane %v214_v35, 1  ;;  %v310_v41 = vrot.slane %v309_v36, 4  ;;  %vm351_vm5 = vmxor %vm908_vm0, %vm349_vm10  ;;  %v247_v43 = vadd.s32 %v246_v33, %v245_v29 }
  0x6b   :  { %v342_v42 = vadd.s32 %v341_v38, %v340_v34  ;;  %v279_v44 = vrot.slane %v278_v37, 2  ;;  %vm350_vm3 = vcmp.ge.s32.totalorder %v904_v3, 0  ;;  %vm851_vm9 = vmmov 1  }
  0x6c   :  { %vm353_vm15 = vmxor %vm351_vm5, %vm851_vm9  ;;  %v216_v46 = vadd.s32 %v215_v40, %v214_v35  ;;  %v311_v47 = vadd.s32 %v310_v41, %v309_v36  ;;  %v386_v2 = vsel %vm366_vm7, %v385_v45, %v183_v39  ;;  %v248_v49 = vrot.slane %v247_v43, 1 }
  0x6d   :  { %v343_v48 = vrot.slane %v342_v42, 4  ;;  %vm352_vm1 = vmxor %vm917_vm4, %vm350_vm3  ;;  %v280_v50 = vadd.s32 %v279_v44, %v278_v37  ;;  %v355_v4 = vsel %vm353_vm15, 1, %v850_v6 }
  0x6e   :  { %vm354_vm8 = vmxor %vm352_vm1, %vm851_vm9  ;;  %v312_v51 = vrot.slane %v311_v47, 2  ;;  %v387_v53 = vsel %vm368_vm6, %v386_v2, %v216_v46  ;;  %v249_v54 = vadd.s32 %v248_v49, %v247_v43 }
  0x6f   :  { %v344_v52 = vadd.s32 %v343_v48, %v342_v42  ;;  %v356_v3 = vsel %vm354_vm8, 1, %v850_v6  ;;  %v281_v55 = vrot.slane %v280_v50, 1 }
  0x70   :  { %v357_v56 = vadd.s32 %v356_v3, %v355_v4  ;;  %v313_v57 = vadd.s32 %v312_v51, %v311_v47  ;;  %v388_v5 = vsel %vm370_vm14, %v387_v53, %v249_v54 }
  0x71   :  { %v345_v58 = vrot.slane %v344_v52, 2  ;;  %v282_v59 = vadd.s32 %v281_v55, %v280_v50 }
  0x72   :  { %v358_v60 = vrot.slane %v357_v56, 4  ;;  %v314_v61 = vrot.slane %v313_v57, 1 }
  0x73   :  { %v346_v62 = vadd.s32 %v345_v58, %v344_v52  ;;  %v389_v63 = vsel %vm372_vm12, %v388_v5, %v282_v59 }
  0x74   :  { %v359_v7 = vadd.s32 %v358_v60, %v357_v56  ;;  %v315_v8 = vadd.s32 %v314_v61, %v313_v57 }
  0x75   :  { %v347_v9 = vrot.slane %v346_v62, 1 }
  0x76   :  { %v360_v10 = vrot.slane %v359_v7, 2  ;;  %v390_v6 = vsel %vm374_vm2, %v389_v63, %v315_v8 }
  0x77   :  { %v348_v11 = vadd.s32 %v347_v9, %v346_v62 }
  0x78   :  { %v361_v12 = vadd.s32 %v360_v10, %v359_v7 }
  0x79   :  { %v391_v13 = vsel %vm376_vm11, %v390_v6, %v348_v11 }
  0x7a   :  { %v362_v14 = vrot.slane %v361_v12, 1  ;;  %403 = vst [vmem:[#allocation7 + $0x10] sm:$0xff] %v391_v13 }
  0x7c   :  { %v363_v15 = vadd.s32 %v362_v14, %v361_v12 }
  0x7e   :  { %v392_v16 = vsel %vm364_vm13, %v363_v15, 0 }
  0x7f   :  { %404 = vst [vmem:[#allocation7 + $0x18] sm:$0xff] %v392_v16 }
  0x80   :  { %829 = shalt.err (!%p826_p6)
}
  0x81   :  { %s830_s10 = scalar_lea.hbm %s1147_s2, 512 }
  0x82   :  { %p831_p7 = scmp.ne.s32.totalorder %s1147_s2, %s830_s10  ;;  %p834_p8 = scmp.lt.u32.totalorder %s830_s10, %s1147_s2 }
  0x84   :  { %p836_p9 = pnand %p834_p8, %p831_p7 }
  0x86   :  { %839 = shalt.err (!%p836_p9)
}
  0x87   :  { %756 = dma.vmem_to_hbm [thread:$0]  %s751_s6, 512, %s1147_s2, [#allocation4], %s847_s19, %s847_s19, %s848_s20  }
  0x88   :  { %844 = dma.done.wait [#allocation4], 512  }
  0x89   :  { %845 = vsyncadd [#allocation4], 4294966784 }
  0x8a   :  { %760 = vsyncpa [#allocation3], 1 }
  0x8b   :  { %761 = vsyncpa [#allocation6], 1 }
  0x8c   :  { %762 = vsyncpa [#allocation4], 1 }

</bundles_post_ra>
